<compile_context>
chip_gen: v5e
topology: v5e:2x2
jax: 0.10.0
libtpu: 0.0.40
codegen_flags: <defaults>
</compile_context>

<pallas_src>
import jax
import jax.numpy as jnp
from jax.experimental import pallas as pl
from jax.experimental.pallas import tpu as pltpu


_LANE = 128            # vreg lane width
_TSUB_TARGET = 1024    # sublane rows per block -> 1024*128*4 B = 512 KiB per buffer


def _mul_kernel(x_ref, s_ref, z_ref):
    # Elementwise multiply; scale tile broadcasts over the size-1 batch dim.
    z_ref[...] = x_ref[...] * s_ref[...]


def _logsum_kernel(s_ref, out_ref):
    # Accumulate sum(log(scale)) across D tiles into the resident (1,1) output.
    @pl.when(pl.program_id(0) == 0)
    def _():
        out_ref[...] = jnp.zeros_like(out_ref)

    out_ref[...] += jnp.sum(jnp.log(s_ref[...].astype(jnp.float32)))


def _choose_tiling(D):
    """Rows of width-128 lanes, tile rows per block, padded row count."""
    rows = -(-D // _LANE)
    tsub = rows if rows <= _TSUB_TARGET else _TSUB_TARGET  # full extent or mult. of 8
    rows_pad = -(-rows // tsub) * tsub
    return tsub, rows_pad


def scale_forward(x, scale):
    """Pallas forward for Scale.

    Args:
      x:     (B, ...) float32
      scale: (1, ...) float32, strictly positive, same trailing dims as x.
    Returns:
      z:      same shape/dtype as x
      logdet: (B, 1) float32
    """
    B = x.shape[0]
    D = 1
    for d in x.shape[1:]:
        D *= d

    tsub, rows_pad = _choose_tiling(D)
    d_pad = rows_pad * _LANE
    n_d = rows_pad // tsub
    itemsize = jnp.dtype(x.dtype).itemsize

    x2 = x.reshape(B, D)
    s2 = scale.reshape(1, D)
    if d_pad != D:
        # Pad x with 0 and scale with 1 (log(1)=0), so results are unchanged.
        x2 = jnp.pad(x2, ((0, 0), (0, d_pad - D)))
        s2 = jnp.pad(s2, ((0, 0), (0, d_pad - D)), constant_values=1.0)
    x3 = x2.reshape(B, rows_pad, _LANE)
    s3 = s2.reshape(1, rows_pad, _LANE)

    # --- z = x * scale : pipelined tiles, both grid axes parallel -----------
    z3 = pl.pallas_call(
        _mul_kernel,
        out_shape=jax.ShapeDtypeStruct((B, rows_pad, _LANE), x.dtype),
        grid_spec=pltpu.PrefetchScalarGridSpec(
            num_scalar_prefetch=0,
            grid=(n_d, B),  # D-tile axis outer, batch inner -> scale tile reused
            in_specs=[
                pl.BlockSpec((1, tsub, _LANE), lambda d, b: (b, d, 0)),
                pl.BlockSpec((1, tsub, _LANE), lambda d, b: (0, d, 0)),
            ],
            out_specs=pl.BlockSpec((1, tsub, _LANE), lambda d, b: (b, d, 0)),
        ),
        compiler_params=pltpu.CompilerParams(
            dimension_semantics=("parallel", "parallel"),
        ),
        cost_estimate=pl.CostEstimate(
            flops=B * D,
            transcendentals=0,
            bytes_accessed=(2 * B * D + D) * itemsize,
        ),
    )(x3, s3)

    # --- logdet = sum(log(scale)) : tiny accumulate-then-finalize kernel ----
    logsum = pl.pallas_call(
        _logsum_kernel,
        out_shape=jax.ShapeDtypeStruct((1, 1), jnp.float32),
        grid_spec=pltpu.PrefetchScalarGridSpec(
            num_scalar_prefetch=0,
            grid=(n_d,),
            in_specs=[pl.BlockSpec((1, tsub, _LANE), lambda d: (0, d, 0))],
            out_specs=pl.BlockSpec((1, 1), lambda d: (0, 0)),
        ),
        compiler_params=pltpu.CompilerParams(
            dimension_semantics=("arbitrary",),
        ),
        cost_estimate=pl.CostEstimate(
            flops=D, transcendentals=D, bytes_accessed=D * 4 + 4,
        ),
    )(s3)

    z = z3.reshape(B, d_pad)[:, :D].reshape(x.shape)
    logdet = jnp.broadcast_to(logsum, (B, 1)).astype(jnp.float32)
    return z, logdet


if __name__ == "__main__":
    key = jax.random.PRNGKey(0)
    kx, ks = jax.random.split(key)

    B, C, H, W = 2, 4, 16, 16
    x = jax.random.normal(kx, (B, C, H, W), dtype=jnp.float32)
    # Deterministic, strictly-positive scale parameter, shape (1, C, H, W).
    scale = 0.5 + jax.random.uniform(ks, (1, C, H, W), dtype=jnp.float32)

    z, logdet = scale_forward(x, scale)
    jax.block_until_ready(z)
    jax.block_until_ready(logdet)

    # Reference check (plain JAX).
    z_ref = x * scale
    logdet_ref = jnp.broadcast_to(jnp.sum(jnp.log(scale)).reshape(1, 1), (B, 1))
    assert z.shape == (B, C, H, W)
    assert logdet.shape == (B, 1)
    assert jnp.allclose(z, z_ref, atol=1e-5, rtol=1e-5)
    assert jnp.allclose(logdet, logdet_ref, atol=1e-4, rtol=1e-5)

    print("KERNEL_OK")
</pallas_src>

<mosaic_0001>
module attributes {stable_mosaic.version = 11 : i64} {
  func.func @_mul_kernel(%arg0: i32, %arg1: i32, %arg2: memref<1x8x128xf32, #tpu.memory_space<vmem>>, %arg3: memref<1x8x128xf32, #tpu.memory_space<vmem>>, %arg4: memref<1x8x128xf32, #tpu.memory_space<vmem>>) attributes {dimension_semantics = [#tpu.dimension_semantics<parallel>, #tpu.dimension_semantics<parallel>], iteration_bounds = array<i64: 1, 2>, scalar_prefetch = 0 : i64, scratch_operands = 0 : i64, tpu.core_type = #tpu.core_type<tc>, window_params = [{transform_indices = @transform_0, window_bounds = array<i64: 1, 8, 128>}, {transform_indices = @transform_1, window_bounds = array<i64: 1, 8, 128>}, {transform_indices = @transform_2, window_bounds = array<i64: 1, 8, 128>}]} {
    %c0 = arith.constant 0 : index
    %c0_0 = arith.constant 0 : index
    %c0_1 = arith.constant 0 : index
    %0 = vector.load %arg2[%c0, %c0_0, %c0_1] : memref<1x8x128xf32, #tpu.memory_space<vmem>>, vector<1x8x128xf32>
    %c0_2 = arith.constant 0 : index
    %c0_3 = arith.constant 0 : index
    %c0_4 = arith.constant 0 : index
    %1 = vector.load %arg3[%c0_2, %c0_3, %c0_4] : memref<1x8x128xf32, #tpu.memory_space<vmem>>, vector<1x8x128xf32>
    %2 = arith.mulf %0, %1 : vector<1x8x128xf32>
    %c0_5 = arith.constant 0 : index
    %c0_6 = arith.constant 0 : index
    %c0_7 = arith.constant 0 : index
    %3 = vector.load %arg4[%c0_5, %c0_6, %c0_7] : memref<1x8x128xf32, #tpu.memory_space<vmem>>, vector<1x8x128xf32>
    tpu.vector_store %arg4[%c0_5, %c0_6, %c0_7], %2 {strides = array<i32>} : memref<1x8x128xf32, #tpu.memory_space<vmem>>, vector<1x8x128xf32>,
    return
  }
  func.func @transform_0(%arg0: i32, %arg1: i32) -> (i32, i32, i32) {
    %c0_i32 = arith.constant 0 : i32
    %c0_i32_0 = arith.constant 0 : i32
    return %arg1, %arg0, %c0_i32 : i32, i32, i32
  }
  func.func @transform_1(%arg0: i32, %arg1: i32) -> (i32, i32, i32) {
    %c0_i32 = arith.constant 0 : i32
    %c0_i32_0 = arith.constant 0 : i32
    %c0_i32_1 = arith.constant 0 : i32
    return %c0_i32, %arg0, %c0_i32_0 : i32, i32, i32
  }
  func.func @transform_2(%arg0: i32, %arg1: i32) -> (i32, i32, i32) {
    %c0_i32 = arith.constant 0 : i32
    %c0_i32_0 = arith.constant 0 : i32
    return %arg1, %arg0, %c0_i32 : i32, i32, i32
  }
}

</mosaic_0001>

<bundles_post_ra>
// kernel: tpu_custom_call.1
= control target key start
LH: loop header
LB: loop body
LE: loop exit
PB: predicated region body
PF: predicated region fallthrough
CT: control target
= control target key end

     0   :  { %7 = vsyncpa [#allocation3], 0  ;;  %s714_s0 = inlined_call_operand.hbm [shape: f32[2,8,128], index: 0, kind: input, shape index: {}]   ;;  %s715_s1 = inlined_call_operand.hbm [shape: f32[1,8,128], index: 1, kind: input, shape index: {}]   ;;  %s716_s2 = inlined_call_operand.hbm [shape: f32[2,8,128], index: 2, kind: output, shape index: {}]  }
   0x1   :  { %9 = vsyncpa [#allocation3 + $0x1], 0 }
   0x2   :  { %10 = vsyncpa [#allocation6], 0 }
   0x3   :  { %11 = vsyncpa [#allocation4], 0 }
   0x4   :  { %13 = vsyncpa [#allocation4 + $0x1], 0  ;;  %s565_s9 = smov 0   ;;  %s567_s10 = smov 0  }
   0x5   :  { %s569_s11 = smov 0   ;;  %s571_s12 = smov 0  }
   0x6   :  { %s573_s13 = smov 0   ;;  %s575_s14 = smov 0  }
   0x7 LB: > { %s313_s15 = sadd.s32 4294967295, %s547_s14   ;;  %s314_s16 = sadd.s32 4294967294, %s547_s14   ;;  %s547_s14 = sphi %s575_s14, %s19_s14   ;;  %s543_s13 = sphi %s573_s13, %s728_s13   ;;  %s539_s12 = sphi %s571_s12, %s727_s12   ;;  %s535_s11 = sphi %s569_s11, %s726_s11   ;;  %s531_s10 = sphi %s567_s10, %s725_s10   ;;  %s527_s9 = sphi %s565_s9, %s724_s9  }
   0x8   : > { %p53_p0 = scmp.ne.s32.totalorder %s531_s10, %s527_s9  ;;  %p599_p1 = scmp.eq.s32.totalorder %s313_s15, 0 }
   0x9   : > { %p603_p2 = scmp.eq.s32.totalorder %s313_s15, 1  ;;  %p111_p3 = scmp.eq.s32.totalorder %s314_s16, 1 }
   0xa   : > { %p609_p4 = por %p599_p1, %p53_p0  ;;  %p315_p5 = scmp.ge.s32.totalorder %s547_s14, 1 }
   0xb   : > { %p614_p6 = por %p111_p3, %p53_p0  ;;  %p118_p7 = scmp.lt.s32.totalorder %s547_s14, 3 }
   0xc   : > { %s132_s23 = sshll.u32 %s715_s1, 4  ;;  %p317_p9 = scmp.ge.s32.totalorder %s547_s14, 2  ;;  %s133_s23 = int_to_ptr.hbm [resolvable:$true] %s132_s23 }
   0xd   : > { %p622_p8 = pnand %p315_p5, %p118_p7  ;;  %s549_s25 = smov [#allocation5]  }
   0xe   : > { %s134_s26 = sshll.u32 %s549_s25, 4  ;;  %s28_s27 = sadd.s32 1, %s543_s13  ;;  %s135_s26 = int_to_ptr.vmem [resolvable:$true] %s134_s26 }
   0xf   : > { %p336_p10 = pneg %p622_p8  ;;  %p29_p12 = scmp.ge.s32.totalorder %s28_s27, 2 }
  0x10   : > { %s40_s28 = sadd.s32 1, %s535_s11  ;;  %p47_p13 = scmp.ne.s32.totalorder %s535_s11, %s531_s10 }
  0x11   : > { %p337_p11 = pnand %p336_p10, %p599_p1  ;;  %p48_p0 = scmp.eq.s32.totalorder %s547_s14, 0 }
  0x12   : > { %s730_s27 = smov (%p29_p12, %s28_s27), 0  ;;  %p644_p5 = por %p603_p2, %p47_p13 }
  0x13   : > { %339 = dma.hbm_to_vmem [thread:$0]  (!%p337_p11), %s133_s23, 128, %s135_s26, [#allocation6]  }
  0x14   : > { %p638_p3 = por %p48_p0, %p47_p13  ;;  %s35_s3 = ssub.s32 %s543_s13, %s730_s27 }
  0x15   : > { %p349_p7 = scmp.lt.s32.totalorder %s547_s14, 2  ;;  %p38_p10 = scmp.eq.s32.totalorder %s35_s3, 0 }
  0x16   : > { %s145_s4 = sand.u32 1, %s535_s11   ;;  %s319_s7 = sshll.u32 %s543_s13, 3 }
  0x17   : > { %s318_s5 = sshll.u32 %s145_s4, 3  ;;  %s154_s16 = scalar_lea.hbm %s714_s0, %s319_s7 }
  0x18   : > { %s653_s6 = scalar_select %p38_p10, %s535_s11, %s40_s28  }
  0x19   : > { %s149_s21 = scalar_lea.vmem [#allocation2], %s318_s5  ;;  %s156_s18 = sshll.u32 %s154_s16, 4  ;;  %s157_s18 = int_to_ptr.hbm [resolvable:$true] %s156_s18 }
  0x1a   : > { %s158_s22 = sshll.u32 %s149_s21, 4  ;;  %p341_p2 = pnand %p349_p7, %p638_p3  ;;  %s159_s22 = int_to_ptr.vmem [resolvable:$true] %s158_s22 }
  0x1b   : > { %s146_s23 = scalar_lea.sflag [#allocation3], %s145_s4  ;;  %167 = sbr.rel (%p622_p8) target bundleno = 50 (0x32), region = 28 }
  0x1c   : > { %343 = dma.hbm_to_vmem [thread:$0]  (!%p341_p2), %s157_s18, 128, %s159_s22, %s146_s23  }
  0x1d   : > { %s664_s25 = sand.u32 (!%p622_p8), 1, %s531_s10  }
  0x1e   : > { %s321_s26 = sshll.u32 (!%p622_p8), %s664_s25, 3  ;;  %s170_s28 = scalar_lea.sflag (!%p622_p8), [#allocation3], %s664_s25 }
  0x1f   : > { %s173_s3 = scalar_lea.vmem (!%p622_p8), [#allocation2], %s321_s26 }
  0x20   : > { %514 = dma.done.wait (%p609_p4), %s170_s28, 128  }
  0x21   : > { %516 = vsyncadd (%p609_p4), %s170_s28, 4294967168 }
  0x22   : > { %518 = dma.done.wait (%p599_p1), [#allocation6], 128  }
  0x23   : > { %520 = vsyncadd (%p599_p1), [#allocation6], 4294967168  ;;  %s325_s24 = sshll.u32 %s539_s12, 3  ;;  %s199_s7 = scalar_lea.vmem [#allocation7], %s321_s26  ;;  %v200_v0 = vld [vmem:[%s173_s3] sm:$0xff]  ;;  %v201_v1 = vld [vmem:[#allocation5] sm:$0xff] }
  0x24   : > { %s216_s5 = scalar_lea.hbm %s716_s2, %s325_s24  ;;  %s218_s8 = sshll.u32 %s199_s7, 4  ;;  %v202_v2 = vmul.f32 %v201_v1, %v200_v0  ;;  %s219_s8 = int_to_ptr.vmem [resolvable:$true] %s218_s8 }
  0x25   : > { %s220_s15 = sshll.u32 %s216_s5, 4  ;;  %s205_s19 = scalar_lea.sflag [#allocation4], %s664_s25  ;;  %s221_s15 = int_to_ptr.hbm [resolvable:$true] %s220_s15 }
  0x26   : > { %203 = vst [vmem:[%s199_s7] sm:$0xff] %v202_v2  ;;  %s475_s17 = sshra.s32 %s221_s15, 4  ;;  %s481_s22 = scalar_lea.hbm %s716_s2, 16  ;;  %s476_s17 = int_to_ptr.hbm [resolvable:$true] %s475_s17 }
  0x27   : > { %s477_s16 = scalar_lea.hbm %s476_s17, 8  ;;  %p482_p11 = scmp.lt.s32.totalorder %s476_s17, %s716_s2 }
  0x28   : > { %p478_p1 = scmp.ne.s32.totalorder %s476_s17, %s477_s16  ;;  %p483_p12 = scmp.lt.s32.totalorder %s481_s22, %s477_s16 }
  0x2a   : > { %p479_p4 = pnand %p478_p1, %p644_p5  ;;  %p484_p13 = por %p483_p12, %p482_p11 }
  0x2c   : > { %p480_p8 = pneg %p479_p4 }
  0x2e   : > { %p485_p0 = pnand %p484_p13, %p480_p8 }
  0x30   : > { %488 = shalt.err (!%p485_p0)
}
  0x31   : > { %334 = dma.vmem_to_hbm [thread:$0]  (%p644_p5), %s219_s8, 128, %s221_s15, %s205_s19  }
  0x32 PF: > { %s232_s25 = sand.u32 1, %s527_s9   ;;  %p345_p3 = pnand %p317_p9, %p614_p6 }
  0x33   : > { %s233_s26 = scalar_lea.sflag [#allocation4], %s232_s25 }
  0x34   : > { %p346_p7 = pneg %p345_p3 }
  0x36   : > { %522 = dma.done.wait (%p346_p7), %s233_s26, 128  }
  0x37   : > { %524 = vsyncadd (%p346_p7), %s233_s26, 4294967168  ;;  %s19_s14 = sadd.s32 1, %s547_s14   ;;  %s724_s9 = smov %s531_s10 }
  0x38   : > { %p16_p10 = scmp.ge.s32.totalorder %s19_s14, 4   ;;  %s725_s10 = smov %s535_s11 }
  0x39   : > { %s726_s11 = smov %s653_s6  ;;  %s727_s12 = smov %s543_s13 }
  0x3a   : > { %s728_s13 = smov %s730_s27  ;;  %18 = sbr.rel (!%p16_p10) target bundleno = 7 (0x7), region = 78 }
  0x3f   :  { %239 = vsyncpa [#allocation3], 1 }
  0x40   :  { %241 = vsyncpa [#allocation3 + $0x1], 1 }
  0x41   :  { %242 = vsyncpa [#allocation6], 1 }
  0x42   :  { %243 = vsyncpa [#allocation4], 1 }
  0x43   :  { %245 = vsyncpa [#allocation4 + $0x1], 1 }

</bundles_post_ra>
